<compile_context>
chip_gen: v7x
topology: tpu7x:2x2x1
jax: 0.10.0
libtpu: 0.0.40
codegen_flags: <defaults>
</compile_context>

<pallas_src>
import jax
import jax.numpy as jnp
from jax.experimental import pallas as pl
from jax.experimental.pallas import tpu as pltpu

BN_EPS = 1e-5


def _round_up(n, m):
    return ((n + m - 1) // m) * m


def head_kernel(x_ref, w0_ref, pk_ref, w1_ref, fb1_ref, out_ref, feat_ref):
    # fc_0 with bn0 pre-folded into the weights: h = relu(x @ W0' + b0')
    h = jnp.dot(x_ref[...], w0_ref[...], preferred_element_type=jnp.float32)
    h = jnp.maximum(h + pk_ref[0:1, :], 0.0)

    # bn1 (eval mode), precomputed scale/shift: f0 = h * s1 + t1
    f0 = h * pk_ref[1:2, :] + pk_ref[2:3, :]
    feat_ref[...] = f0.astype(feat_ref.dtype)

    # fc_1 -> logits (written into a lane-dense 128-multiple slab)
    out = jnp.dot(f0.astype(w1_ref.dtype), w1_ref[...],
                  preferred_element_type=jnp.float32) + fb1_ref[...]
    out_ref[...] = out.astype(out_ref.dtype)


def head_forward(x, params, *, block_b=512, compute_dtype=jnp.float32):
    """Head forward pass as one batch-tiled Pallas kernel.

    x: (B, D_in) float32
    params: dict from init_head_params (raw, un-folded PyTorch-style params).
    Returns {'output': (B, n_class), 'feature': (B, hidden_dim)}.
    """
    B, D_in = x.shape
    H = params["w0"].shape[1]
    C = params["w1"].shape[1]

    # ---- Fold BN stats into affine weights (off-kernel; cacheable). ----
    s0 = params["g0"] * jax.lax.rsqrt(params["v0"] + BN_EPS)      # (1, D_in)
    t0 = params["b0"] - params["m0"] * s0                         # (1, D_in)
    w0f = params["w0"] * s0.T                                     # diag(s0) @ W0
    b0f = t0 @ params["w0"] + params["fb0"]                       # (1, H)
    s1 = params["g1"] * jax.lax.rsqrt(params["v1"] + BN_EPS)      # (1, H)
    t1 = params["b1"] - params["m1"] * s1                         # (1, H)

    # ---- Pad to lane/sublane-friendly shapes (unmasked, lane-dense I/O). ----
    D_pad = _round_up(D_in, 128)
    H_pad = _round_up(H, 128)
    C_pad = _round_up(C, 128)
    TB = min(block_b, _round_up(B, 8))        # sublane-aligned batch tile
    B_pad = _round_up(B, TB)

    def pad2(a, rows, cols):
        return jnp.pad(a, ((0, rows - a.shape[0]), (0, cols - a.shape[1])))

    xp = pad2(x, B_pad, D_pad).astype(compute_dtype)
    w0p = pad2(w0f, D_pad, H_pad).astype(compute_dtype)
    w1p = pad2(params["w1"], H_pad, C_pad).astype(compute_dtype)
    # Packed small params: row0 = b0', row1 = s1, row2 = t1 (zeros in padded
    # lanes ⇒ padded hidden columns stay exactly 0 through relu/bn1/fc_1).
    pk = jnp.concatenate(
        [pad2(b0f, 1, H_pad), pad2(s1, 1, H_pad), pad2(t1, 1, H_pad)],
        axis=0).astype(jnp.float32)
    fb1p = pad2(params["fb1"], 1, C_pad).astype(jnp.float32)

    grid = (B_pad // TB,)

    out, feat = pl.pallas_call(
        head_kernel,
        out_shape=(
            jax.ShapeDtypeStruct((B_pad, C_pad), jnp.float32),
            jax.ShapeDtypeStruct((B_pad, H_pad), jnp.float32),
        ),
        grid=grid,
        in_specs=[
            pl.BlockSpec((TB, D_pad), lambda i: (i, 0)),       # x (batch-tiled)
            pl.BlockSpec((D_pad, H_pad), lambda i: (0, 0)),    # W0' (resident)
            pl.BlockSpec((3, H_pad), lambda i: (0, 0)),        # packed b0'/s1/t1
            pl.BlockSpec((H_pad, C_pad), lambda i: (0, 0)),    # W1 (resident)
            pl.BlockSpec((1, C_pad), lambda i: (0, 0)),        # fb1
        ],
        out_specs=(
            pl.BlockSpec((TB, C_pad), lambda i: (i, 0)),       # logits slab
            pl.BlockSpec((TB, H_pad), lambda i: (i, 0)),       # feature slab
        ),
        compiler_params=pltpu.CompilerParams(
            dimension_semantics=("parallel",)),
    )(xp, w0p, pk, w1p, fb1p)

    return {"output": out[:B, :C], "feature": feat[:B, :H]}


def init_head_params(key, input_dim, hidden_dim, n_class=8):
    """Deterministic synthetic parameters matching Head.__init__ shapes."""
    ks = jax.random.split(key, 10)

    def linear_init(kw, kb, fan_in, fan_out):
        bound = 1.0 / jnp.sqrt(fan_in)
        # Stored transposed: (in, out) for x @ W.
        w = jax.random.uniform(kw, (fan_in, fan_out), jnp.float32, -bound, bound)
        b = jax.random.uniform(kb, (1, fan_out), jnp.float32, -bound, bound)
        return w, b

    w0, fb0 = linear_init(ks[0], ks[1], input_dim, hidden_dim)
    w1, fb1 = linear_init(ks[2], ks[3], hidden_dim, n_class)

    # BN affine + running stats (non-trivial but deterministic).
    g0 = jax.random.uniform(ks[4], (1, input_dim), jnp.float32, 0.5, 1.5)
    b0 = jax.random.uniform(ks[5], (1, input_dim), jnp.float32, -0.5, 0.5)
    m0 = jax.random.uniform(ks[6], (1, input_dim), jnp.float32, -1.0, 1.0)
    v0 = jax.random.uniform(ks[7], (1, input_dim), jnp.float32, 0.5, 1.5)

    g1 = jax.random.uniform(ks[8], (1, hidden_dim), jnp.float32, 0.5, 1.5)
    b1 = jax.random.uniform(ks[9], (1, hidden_dim), jnp.float32, -0.5, 0.5)
    m1 = jnp.zeros((1, hidden_dim), jnp.float32)
    v1 = jnp.ones((1, hidden_dim), jnp.float32)

    return dict(g0=g0, b0=b0, m0=m0, v0=v0, w0=w0, fb0=fb0,
                g1=g1, b1=b1, m1=m1, v1=v1, w1=w1, fb1=fb1)


def head_reference(x, p):
    """Pure-JAX reference of the eval-mode forward (matches PyTorch Head)."""
    xn = (x - p["m0"]) / jnp.sqrt(p["v0"] + BN_EPS) * p["g0"] + p["b0"]
    h = jnp.maximum(xn @ p["w0"] + p["fb0"], 0.0)
    f0 = (h - p["m1"]) / jnp.sqrt(p["v1"] + BN_EPS) * p["g1"] + p["b1"]
    out = f0 @ p["w1"] + p["fb1"]
    return {"output": out, "feature": f0}


if __name__ == "__main__":
    B, D_IN, HID, NCLASS = 16, 32, 32, 8

    key = jax.random.PRNGKey(0)
    kx, kp = jax.random.split(key)
    x = jax.random.normal(kx, (B, D_IN), dtype=jnp.float32)
    params = init_head_params(kp, D_IN, HID, NCLASS)

    result = head_forward(x, params)
    jax.block_until_ready(result)

    ref = head_reference(x, params)
    assert result["output"].shape == (B, NCLASS)
    assert result["feature"].shape == (B, HID)
    assert jnp.allclose(result["output"], ref["output"], atol=1e-4, rtol=1e-4)
    assert jnp.allclose(result["feature"], ref["feature"], atol=1e-4, rtol=1e-4)

    print("KERNEL_OK")
</pallas_src>

<mosaic_0001>
module attributes {stable_mosaic.version = 11 : i64} {
  func.func @head_kernel(%arg0: i32, %arg1: memref<16x128xf32, #tpu.memory_space<vmem>>, %arg2: memref<128x128xf32, #tpu.memory_space<vmem>>, %arg3: memref<3x128xf32, #tpu.memory_space<vmem>>, %arg4: memref<128x128xf32, #tpu.memory_space<vmem>>, %arg5: memref<1x128xf32, #tpu.memory_space<vmem>>, %arg6: memref<16x128xf32, #tpu.memory_space<vmem>>, %arg7: memref<16x128xf32, #tpu.memory_space<vmem>>) attributes {dimension_semantics = [#tpu.dimension_semantics<parallel>], iteration_bounds = array<i64: 1>, scalar_prefetch = 0 : i64, scratch_operands = 0 : i64, tpu.core_type = #tpu.core_type<tc>, window_params = [{transform_indices = @transform_0, window_bounds = array<i64: 16, 128>}, {pipeline_mode = #tpu.pipeline_mode<synchronous>, transform_indices = @transform_1, window_bounds = array<i64: 128, 128>}, {pipeline_mode = #tpu.pipeline_mode<synchronous>, transform_indices = @transform_2, window_bounds = array<i64: 3, 128>}, {pipeline_mode = #tpu.pipeline_mode<synchronous>, transform_indices = @transform_3, window_bounds = array<i64: 128, 128>}, {pipeline_mode = #tpu.pipeline_mode<synchronous>, transform_indices = @transform_4, window_bounds = array<i64: 1, 128>}, {transform_indices = @transform_5, window_bounds = array<i64: 16, 128>}, {transform_indices = @transform_6, window_bounds = array<i64: 16, 128>}]} {
    %c0 = arith.constant 0 : index
    %c0_0 = arith.constant 0 : index
    %0 = vector.load %arg1[%c0, %c0_0] : memref<16x128xf32, #tpu.memory_space<vmem>>, vector<16x128xf32>
    %c0_1 = arith.constant 0 : index
    %c0_2 = arith.constant 0 : index
    %1 = vector.load %arg2[%c0_1, %c0_2] : memref<128x128xf32, #tpu.memory_space<vmem>>, vector<128x128xf32>
    %cst = arith.constant dense<0.000000e+00> : vector<16x128xf32>
    %2 = tpu.matmul %0, %1, %cst {dimension_numbers = #tpu.dot_dimension_numbers<[1], [0], [0], [1], [0, 0, 1, 1], [], []>} : vector<16x128xf32>, vector<128x128xf32>, vector<16x128xf32> -> vector<16x128xf32>
    %c0_3 = arith.constant 0 : index
    %c0_4 = arith.constant 0 : index
    %3 = vector.load %arg3[%c0_3, %c0_4] : memref<3x128xf32, #tpu.memory_space<vmem>>, vector<1x128xf32>
    %4 = vector.broadcast %3 : vector<1x128xf32> to vector<16x128xf32>
    %5 = arith.addf %2, %4 : vector<16x128xf32>
    %cst_5 = arith.constant 0.000000e+00 : f32
    %6 = vector.broadcast %cst_5 : f32 to vector<16x128xf32>
    %7 = arith.maximumf %5, %6 : vector<16x128xf32>
    %c1 = arith.constant 1 : index
    %c0_6 = arith.constant 0 : index
    %8 = vector.load %arg3[%c1, %c0_6] : memref<3x128xf32, #tpu.memory_space<vmem>>, vector<1x128xf32>
    %9 = vector.broadcast %8 : vector<1x128xf32> to vector<16x128xf32>
    %10 = arith.mulf %7, %9 : vector<16x128xf32>
    %c2 = arith.constant 2 : index
    %c0_7 = arith.constant 0 : index
    %11 = vector.load %arg3[%c2, %c0_7] : memref<3x128xf32, #tpu.memory_space<vmem>>, vector<1x128xf32>
    %12 = vector.broadcast %11 : vector<1x128xf32> to vector<16x128xf32>
    %13 = arith.addf %10, %12 : vector<16x128xf32>
    %c0_8 = arith.constant 0 : index
    %c0_9 = arith.constant 0 : index
    %14 = vector.load %arg7[%c0_8, %c0_9] : memref<16x128xf32, #tpu.memory_space<vmem>>, vector<16x128xf32>
    tpu.vector_store %arg7[%c0_8, %c0_9], %13 {strides = array<i32>} : memref<16x128xf32, #tpu.memory_space<vmem>>, vector<16x128xf32>,
    %c0_10 = arith.constant 0 : index
    %c0_11 = arith.constant 0 : index
    %15 = vector.load %arg4[%c0_10, %c0_11] : memref<128x128xf32, #tpu.memory_space<vmem>>, vector<128x128xf32>
    %cst_12 = arith.constant dense<0.000000e+00> : vector<16x128xf32>
    %16 = tpu.matmul %13, %15, %cst_12 {dimension_numbers = #tpu.dot_dimension_numbers<[1], [0], [0], [1], [0, 0, 1, 1], [], []>} : vector<16x128xf32>, vector<128x128xf32>, vector<16x128xf32> -> vector<16x128xf32>
    %c0_13 = arith.constant 0 : index
    %c0_14 = arith.constant 0 : index
    %17 = vector.load %arg5[%c0_13, %c0_14] : memref<1x128xf32, #tpu.memory_space<vmem>>, vector<1x128xf32>
    %18 = vector.broadcast %17 : vector<1x128xf32> to vector<16x128xf32>
    %19 = arith.addf %16, %18 : vector<16x128xf32>
    %c0_15 = arith.constant 0 : index
    %c0_16 = arith.constant 0 : index
    %20 = vector.load %arg6[%c0_15, %c0_16] : memref<16x128xf32, #tpu.memory_space<vmem>>, vector<16x128xf32>
    tpu.vector_store %arg6[%c0_15, %c0_16], %19 {strides = array<i32>} : memref<16x128xf32, #tpu.memory_space<vmem>>, vector<16x128xf32>,
    return
  }
  func.func @transform_0(%arg0: i32) -> (i32, i32) {
    %c0_i32 = arith.constant 0 : i32
    %c0_i32_0 = arith.constant 0 : i32
    return %arg0, %c0_i32 : i32, i32
  }
  func.func @transform_1(%arg0: i32) -> (i32, i32) {
    %c0_i32 = arith.constant 0 : i32
    %c0_i32_0 = arith.constant 0 : i32
    %c0_i32_1 = arith.constant 0 : i32
    return %c0_i32, %c0_i32_0 : i32, i32
  }
  func.func @transform_2(%arg0: i32) -> (i32, i32) {
    %c0_i32 = arith.constant 0 : i32
    %c0_i32_0 = arith.constant 0 : i32
    %c0_i32_1 = arith.constant 0 : i32
    return %c0_i32, %c0_i32_0 : i32, i32
  }
  func.func @transform_3(%arg0: i32) -> (i32, i32) {
    %c0_i32 = arith.constant 0 : i32
    %c0_i32_0 = arith.constant 0 : i32
    %c0_i32_1 = arith.constant 0 : i32
    return %c0_i32, %c0_i32_0 : i32, i32
  }
  func.func @transform_4(%arg0: i32) -> (i32, i32) {
    %c0_i32 = arith.constant 0 : i32
    %c0_i32_0 = arith.constant 0 : i32
    %c0_i32_1 = arith.constant 0 : i32
    return %c0_i32, %c0_i32_0 : i32, i32
  }
  func.func @transform_5(%arg0: i32) -> (i32, i32) {
    %c0_i32 = arith.constant 0 : i32
    %c0_i32_0 = arith.constant 0 : i32
    return %arg0, %c0_i32 : i32, i32
  }
  func.func @transform_6(%arg0: i32) -> (i32, i32) {
    %c0_i32 = arith.constant 0 : i32
    %c0_i32_0 = arith.constant 0 : i32
    return %arg0, %c0_i32 : i32, i32
  }
}

</mosaic_0001>

<bundles_post_ra>
// kernel: tpu_custom_call.1
= control target key start
LH: loop header
LB: loop body
LE: loop exit
PB: predicated region body
PF: predicated region fallthrough
CT: control target
= control target key end

     0   :  { %12 = vsyncpa [#allocation3], 0  ;;  %s750_s0 = inlined_call_operand.hbm [shape: f32[16,128], index: 0, kind: input, shape index: {}]   ;;  %s751_s1 = inlined_call_operand.hbm [shape: f32[128,128], index: 1, kind: input, shape index: {}]   ;;  %s752_s2 = inlined_call_operand.vmem [shape: f32[3,128], index: 2, kind: input, shape index: {}]   ;;  %s753_s3 = inlined_call_operand.hbm [shape: f32[128,128], index: 3, kind: input, shape index: {}]   ;;  %s754_s4 = inlined_call_operand.vmem [shape: f32[1,128], index: 4, kind: input, shape index: {}]   ;;  %s755_s5 = inlined_call_operand.hbm [shape: f32[16,128], index: 5, kind: output, shape index: {0}]   ;;  %s756_s6 = inlined_call_operand.hbm [shape: f32[16,128], index: 6, kind: output, shape index: {1}]  }
   0x1   :  { %13 = vsyncpa [#allocation6], 0 }
   0x2   :  { %14 = vsyncpa [#allocation4], 0 }
   0x3   :  { %15 = vsyncpa [#allocation10], 0  ;;  %s614_s21 = smov [#allocation5]   ;;  %s615_s23 = smov [#allocation2]  }
   0x4   :  { %s33_s22 = sshll.u32 %s614_s21, 4  ;;  %s21_s24 = sshll.u32 %s615_s23, 4  ;;  %s34_s22 = int_to_ptr.vmem [resolvable:$true] %s33_s22  ;;  %s656_s24 = int_to_ptr.vmem [resolvable:$true] %s21_s24 }
   0x5   :  { %s496_s27 = scalar_lea.hbm %s751_s1, 2048 }
   0x6   :  { %p497_p0 = scmp.ne.s32.totalorder %s751_s1, %s496_s27  ;;  %p500_p1 = scmp.lt.u32.totalorder %s496_s27, %s751_s1 }
   0x8   :  { %p502_p2 = pnand %p500_p1, %p497_p0 }
   0xa   :  { %505 = shalt.err (!%p502_p2)
}
   0xb   :  { %s506_s8 = scalar_lea.vmem %s34_s22, 2048  ;;  %p511_p4 = scmp.lt.s32.totalorder %s34_s22, %s34_s22 }
   0xc   :  { %p507_p3 = scmp.ne.s32.totalorder %s34_s22, %s506_s8  ;;  %p512_p5 = scmp.lt.s32.totalorder %s506_s8, %s506_s8 }
   0xe   :  { %p513_p6 = por %p512_p5, %p511_p4 }
  0x10   :  { %p514_p7 = pnand %p513_p6, %p507_p3 }
  0x12   :  { %517 = shalt.err (!%p514_p7)
}
  0x13   :  { %s616_s9 = smov 128   ;;  %s617_s10 = smov 8  }
  0x14   :  { %39 = dma.hbm_to_vmem [thread:$0]  %s751_s1, 2048, %s34_s22, [#allocation6], %s616_s9, %s616_s9, %s617_s10  }
  0x15   :  { %s518_s15 = scalar_lea.hbm %s750_s0, 256 }
  0x16   :  { %p519_p8 = scmp.ne.s32.totalorder %s750_s0, %s518_s15  ;;  %p522_p9 = scmp.lt.u32.totalorder %s518_s15, %s750_s0 }
  0x18   :  { %p524_p10 = pnand %p522_p9, %p519_p8 }
  0x1a   :  { %527 = shalt.err (!%p524_p10)
}
  0x1b   :  { %s528_s20 = scalar_lea.vmem %s656_s24, 256  ;;  %p533_p12 = scmp.lt.s32.totalorder %s656_s24, %s656_s24 }
  0x1c   :  { %p529_p11 = scmp.ne.s32.totalorder %s656_s24, %s528_s20  ;;  %p534_p13 = scmp.lt.s32.totalorder %s528_s20, %s528_s20 }
  0x1e   :  { %p535_p0 = por %p534_p13, %p533_p12 }
  0x20   :  { %p536_p1 = pnand %p535_p0, %p529_p11 }
  0x22   :  { %539 = shalt.err (!%p536_p1)
}
  0x23   :  { %27 = dma.hbm_to_vmem [thread:$0]  %s750_s0, 256, %s656_s24, [#allocation3], %s616_s9, %s616_s9, %s617_s10  }
  0x24   :  { %s618_s22 = smov [#allocation7]   ;;  %s540_s27 = scalar_lea.hbm %s753_s3, 2048 }
  0x25   :  { %s47_s23 = sshll.u32 %s618_s22, 4  ;;  %p541_p2 = scmp.ne.s32.totalorder %s753_s3, %s540_s27  ;;  %s48_s23 = int_to_ptr.vmem [resolvable:$true] %s47_s23 }
  0x26   :  { %p544_p3 = scmp.lt.u32.totalorder %s540_s27, %s753_s3 }
  0x28   :  { %p546_p4 = pnand %p544_p3, %p541_p2 }
  0x2a   :  { %549 = shalt.err (!%p546_p4)
}
  0x2b   :  { %s550_s8 = scalar_lea.vmem %s48_s23, 2048  ;;  %p555_p6 = scmp.lt.s32.totalorder %s48_s23, %s48_s23 }
  0x2c   :  { %p551_p5 = scmp.ne.s32.totalorder %s48_s23, %s550_s8  ;;  %p556_p7 = scmp.lt.s32.totalorder %s550_s8, %s550_s8 }
  0x2e   :  { %p557_p8 = por %p556_p7, %p555_p6 }
  0x30   :  { %p558_p9 = pnand %p557_p8, %p551_p5 }
  0x32   :  { %561 = shalt.err (!%p558_p9)
}
  0x33   :  { %53 = dma.hbm_to_vmem [thread:$0]  %s753_s3, 2048, %s48_s23, [#allocation6], %s616_s9, %s616_s9, %s617_s10  }
  0x34   :  { %606 = dma.done.wait [#allocation3], 256  }
  0x35   :  { %607 = vsyncadd [#allocation3], 4294967040 }
  0x36   :  { %608 = dma.done.wait [#allocation6], 4096  }
  0x37   :  { %609 = vsyncadd [#allocation6], 4294963200  ;;  %v67_v0 = vld [vmem:[#allocation5] sm:$0xff]  ;;  %v68_v1 = vld [vmem:[#allocation5 + $0x8] sm:$0xff]  ;;  %s619_s16 = smov [#allocation9]  }
  0x38   :  { %v69_v2 = vld [vmem:[#allocation5 + $0x10] sm:$0xff]  ;;  %v425_v3 = vpack.c.bf16 %v68_v1, %v67_v0  ;;  %v70_v4 = vld [vmem:[#allocation5 + $0x18] sm:$0xff]  ;;  %v71_v6 = vld [vmem:[#allocation5 + $0x20] sm:$0xff]  ;;  %s298_s17 = sshll.u32 %s619_s16, 4  ;;  %s299_s17 = int_to_ptr.vmem [resolvable:$true] %s298_s17 }
  0x39   :  { %v429_v5 = vpack.c.bf16 %v70_v4, %v69_v2  ;;  %v72_v7 = vld [vmem:[#allocation5 + $0x28] sm:$0xff]  ;;  %v73_v9 = vld [vmem:[#allocation5 + $0x30] sm:$0xff]  ;;  %v74_v10 = vld [vmem:[#allocation5 + $0x38] sm:$0xff]  ;;  %s562_s18 = scalar_lea.vmem %s299_s17, 256  ;;  %p567_p11 = scmp.lt.s32.totalorder %s299_s17, %s299_s17 }
  0x3a   :  { %426 = vmatprep.subr.bf16.mxu0 %v425_v3  ;;  %v433_v8 = vpack.c.bf16 %v72_v7, %v71_v6  ;;  %v65_v11 = vld [vmem:[#allocation2] sm:$0xff]  ;;  %v181_v12 = vld [vmem:[#allocation7] sm:$0xff]  ;;  %v182_v13 = vld [vmem:[#allocation7 + $0x8] sm:$0xff]  ;;  %v437_v20 = vpack.c.bf16 %v74_v10, %v73_v9  ;;  %p563_p10 = scmp.ne.s32.totalorder %s299_s17, %s562_s18  ;;  %p568_p12 = scmp.lt.s32.totalorder %s562_s18, %s562_s18 }
  0x3b   :  { %428 = vmatpush3.bf16.msra.mxu0 %v425_v3  ;;  %387 = vmatprep.mubr.f32.mxu0 %v65_v11  ;;  %v183_v14 = vld [vmem:[#allocation7 + $0x10] sm:$0xff]  ;;  %v457_v15 = vpack.c.bf16 %v182_v13, %v181_v12  ;;  %v184_v16 = vld [vmem:[#allocation7 + $0x18] sm:$0xff]  ;;  %v185_v18 = vld [vmem:[#allocation7 + $0x20] sm:$0xff] }
  0x3c   :  { %430 = vmatprep.subr.bf16.mxu0 %v429_v5  ;;  %v461_v17 = vpack.c.bf16 %v184_v16, %v183_v14  ;;  %v186_v19 = vld [vmem:[#allocation7 + $0x28] sm:$0xff]  ;;  %v75_v21 = vld [vmem:[#allocation5 + $0x40] sm:$0xff]  ;;  %v187_v24 = vld [vmem:[#allocation7 + $0x30] sm:$0xff]  ;;  %p569_p13 = por %p568_p12, %p567_p11 }
  0x3d   :  { %458 = vmatprep.subr.bf16.mxu1 %v457_v15  ;;  %v76_v22 = vld [vmem:[#allocation5 + $0x48] sm:$0xff]  ;;  %v465_v23 = vpack.c.bf16 %v186_v19, %v185_v18  ;;  %v188_v25 = vld [vmem:[#allocation7 + $0x38] sm:$0xff]  ;;  %v77_v27 = vld [vmem:[#allocation5 + $0x50] sm:$0xff] }
  0x3e   :  { %460 = vmatpush3.bf16.msra.mxu1 %v457_v15  ;;  %v441_v26 = vpack.c.bf16 %v76_v22, %v75_v21  ;;  %v78_v28 = vld [vmem:[#allocation5 + $0x58] sm:$0xff]  ;;  %v469_v29 = vpack.c.bf16 %v188_v25, %v187_v24  ;;  %v189_v30 = vld [vmem:[#allocation7 + $0x40] sm:$0xff]  ;;  %v190_v31 = vld [vmem:[#allocation7 + $0x48] sm:$0xff]  ;;  %p570_p0 = pnand %p569_p13, %p563_p10 }
  0x3f   :  { %432 = vmatpush3.bf16.msra.mxu0 %v429_v5  ;;  %462 = vmatprep.subr.bf16.mxu1 %v461_v17  ;;  %v445_v32 = vpack.c.bf16 %v78_v28, %v77_v27  ;;  %v79_v33 = vld [vmem:[#allocation5 + $0x60] sm:$0xff]  ;;  %v80_v34 = vld [vmem:[#allocation5 + $0x68] sm:$0xff]  ;;  %v473_v35 = vpack.c.bf16 %v190_v31, %v189_v30  ;;  %v191_v36 = vld [vmem:[#allocation7 + $0x50] sm:$0xff] }
  0x40   :  { %434 = vmatprep.subr.bf16.mxu0 %v433_v8  ;;  %v192_v37 = vld [vmem:[#allocation7 + $0x58] sm:$0xff]  ;;  %v449_v38 = vpack.c.bf16 %v80_v34, %v79_v33  ;;  %v81_v39 = vld [vmem:[#allocation5 + $0x70] sm:$0xff]  ;;  %v193_v44 = vld [vmem:[#allocation7 + $0x60] sm:$0xff] }
  0x41   :  { %v82_v40 = vld [vmem:[#allocation5 + $0x78] sm:$0xff]  ;;  %v477_v41 = vpack.c.bf16 %v192_v37, %v191_v36  ;;  %v194_v45 = vld [vmem:[#allocation7 + $0x68] sm:$0xff]  ;;  %v195_v47 = vld [vmem:[#allocation7 + $0x70] sm:$0xff] }
  0x42   :  { %464 = vmatpush3.bf16.msra.mxu1 %v461_v17  ;;  %v453_v42 = vpack.c.bf16 %v82_v40, %v81_v39  ;;  %v66_v43 = vld [vmem:[#allocation2 + $0x8] sm:$0xff]  ;;  %v481_v46 = vpack.c.bf16 %v194_v45, %v193_v44  ;;  %v315_v50 = vld [vmem:[%s752_s2] ss:$0 sm:$0xff]  ;;  %v316_v54 = vld [vmem:[%s752_s2 + $0x1] ss:$0 sm:$0xff] }
  0x43   :  { %436 = vmatpush3.bf16.msra.mxu0 %v433_v8  ;;  %466 = vmatprep.subr.bf16.mxu1 %v465_v23  ;;  %v196_v48 = vld [vmem:[#allocation7 + $0x78] sm:$0xff]  ;;  %v317_v58 = vld [vmem:[%s752_s2 + $0x2] ss:$0 sm:$0xff] }
  0x44   :  { %438 = vmatprep.subr.bf16.mxu0 %v437_v20  ;;  %v485_v49 = vpack.c.bf16 %v196_v48, %v195_v47 }
  0x46   :  { %468 = vmatpush3.bf16.msra.mxu1 %v465_v23 }
  0x47   :  { %440 = vmatpush3.bf16.msra.mxu0 %v437_v20  ;;  %470 = vmatprep.subr.bf16.mxu1 %v469_v29 }
  0x48   :  { %442 = vmatprep.subr.bf16.mxu0 %v441_v26 }
  0x4a   :  { %472 = vmatpush3.bf16.msra.mxu1 %v469_v29 }
  0x4b   :  { %444 = vmatpush3.bf16.msra.mxu0 %v441_v26  ;;  %474 = vmatprep.subr.bf16.mxu1 %v473_v35 }
  0x4c   :  { %446 = vmatprep.subr.bf16.mxu0 %v445_v32 }
  0x4e   :  { %476 = vmatpush3.bf16.msra.mxu1 %v473_v35 }
  0x4f   :  { %448 = vmatpush3.bf16.msra.mxu0 %v445_v32  ;;  %478 = vmatprep.subr.bf16.mxu1 %v477_v41 }
  0x50   :  { %450 = vmatprep.subr.bf16.mxu0 %v449_v38 }
  0x52   :  { %480 = vmatpush3.bf16.msra.mxu1 %v477_v41 }
  0x53   :  { %452 = vmatpush3.bf16.msra.mxu0 %v449_v38  ;;  %482 = vmatprep.subr.bf16.mxu1 %v481_v46 }
  0x54   :  { %454 = vmatprep.subr.bf16.mxu0 %v453_v42 }
  0x56   :  { %484 = vmatpush3.bf16.msra.mxu1 %v481_v46 }
  0x57   :  { %456 = vmatpush3.bf16.msra.mxu0 %v453_v42  ;;  %486 = vmatprep.subr.bf16.mxu1 %v485_v49 }
  0x5a   :  { %388 = vmatmul.mubr.f32.vlgmr.msra.gmra.mrb[0].mxu0 %v66_v43  ;;  %488 = vmatpush3.bf16.msra.mxu1 %v485_v49 }
 0x12d   :  { %v389_v51 = vpop.f32.mrb[0].mxu0 }
 0x12e   :  { %v160_v52 = vadd.f32 %v389_v51, %v315_v50  ;;  %v154_v53 = vpop.f32.mrb[1].mxu0 }
 0x12f   :  { %v155_v55 = vadd.f32 %v315_v50, %v154_v53 }
 0x130   :  { %v164_v56 = vmax.f32 %v160_v52, 0.0 }
 0x131   :  { %v163_v57 = vmax.f32 %v155_v55, 0.0 }
 0x132   :  { %v171_v59 = vmul.f32 %v316_v54, %v164_v56 }
 0x133   :  { %v170_v60 = vmul.f32 %v316_v54, %v163_v57 }
 0x134   :  { %v178_v61 = vadd.f32 %v317_v58, %v171_v59 }
 0x135   :  { %v177_v62 = vadd.f32 %v317_v58, %v170_v60 }
 0x136   :  { %180 = vst [vmem:[#allocation9 + $0x8] sm:$0xff] %v178_v61 }
 0x137   :  { %422 = vmatprep.mubr.f32.mxu1 %v177_v62  ;;  %179 = vst [vmem:[#allocation9] sm:$0xff] %v177_v62 }
 0x138   :  { %423 = vmatmul.mubr.f32.vlgmr.msra.gmra.mrb[0].mxu1 %v178_v61 }
 0x139   :  { %573 = shalt.err (!%p570_p0)
}
 0x13a   :  { %s574_s20 = scalar_lea.hbm %s756_s6, 256 }
 0x13b   :  { %p575_p1 = scmp.ne.s32.totalorder %s756_s6, %s574_s20  ;;  %p578_p2 = scmp.lt.u32.totalorder %s574_s20, %s756_s6 }
 0x13d   :  { %p580_p3 = pnand %p578_p2, %p575_p1 }
 0x13f   :  { %583 = shalt.err (!%p580_p3)
}
 0x140   :  { %304 = dma.vmem_to_hbm [thread:$0]  %s299_s17, 256, %s756_s6, [#allocation10], %s616_s9, %s616_s9, %s617_s10  }
 0x141   :  { %v318_v63 = vld [vmem:[%s754_s4] ss:$0 sm:$0xff]  ;;  %s620_s29 = smov [#allocation8]  }
 0x142   :  { %s286_s30 = sshll.u32 %s620_s29, 4  ;;  %s287_s30 = int_to_ptr.vmem [resolvable:$true] %s286_s30 }
 0x143   :  { %s584_s7 = scalar_lea.vmem %s287_s30, 256  ;;  %p589_p5 = scmp.lt.s32.totalorder %s287_s30, %s287_s30 }
 0x144   :  { %p585_p4 = scmp.ne.s32.totalorder %s287_s30, %s584_s7  ;;  %p590_p6 = scmp.lt.s32.totalorder %s584_s7, %s584_s7 }
 0x146   :  { %p591_p7 = por %p590_p6, %p589_p5 }
 0x148   :  { %p592_p8 = pnand %p591_p7, %p585_p4 }
 0x20b   :  { %v424_v0 = vpop.f32.mrb[0].mxu1 }
 0x20c   :  { %v276_v1 = vadd.f32 %v424_v0, %v318_v63  ;;  %v270_v2 = vpop.f32.mrb[1].mxu1 }
 0x20d   :  { %v271_v3 = vadd.f32 %v318_v63, %v270_v2 }
 0x20e   :  { %280 = vst [vmem:[#allocation8 + $0x8] sm:$0xff] %v276_v1 }
 0x20f   :  { %279 = vst [vmem:[#allocation8] sm:$0xff] %v271_v3 }
 0x210   :  { %595 = shalt.err (!%p592_p8)
}
 0x211   :  { %s596_s4 = scalar_lea.hbm %s755_s5, 256 }
 0x212   :  { %p597_p9 = scmp.ne.s32.totalorder %s755_s5, %s596_s4  ;;  %p600_p10 = scmp.lt.u32.totalorder %s596_s4, %s755_s5 }
 0x214   :  { %p602_p11 = pnand %p600_p10, %p597_p9 }
 0x216   :  { %605 = shalt.err (!%p602_p11)
}
 0x217   :  { %292 = dma.vmem_to_hbm [thread:$0]  %s287_s30, 256, %s755_s5, [#allocation4], %s616_s9, %s616_s9, %s617_s10  }
 0x218   :  { %610 = dma.done.wait [#allocation4], 256  }
 0x219   :  { %611 = vsyncadd [#allocation4], 4294967040 }
 0x21a   :  { %612 = dma.done.wait [#allocation10], 256  }
 0x21b   :  { %613 = vsyncadd [#allocation10], 4294967040 }
 0x21c   :  { %311 = vsyncpa [#allocation3], 1 }
 0x21d   :  { %312 = vsyncpa [#allocation6], 1 }
 0x21e   :  { %313 = vsyncpa [#allocation4], 1 }
 0x21f   :  { %314 = vsyncpa [#allocation10], 1 }

</bundles_post_ra>
